<compile_context>
chip_gen: v5e
topology: v5e:2x2
jax: 0.10.0
libtpu: 0.0.40
codegen_flags: <defaults>
</compile_context>

<pallas_src>
import numpy as np
import jax
import jax.numpy as jnp
from jax.experimental import pallas as pl
from jax.experimental.pallas import tpu as pltpu

LANE = 128            # TPU lane width; all feature dims are padded to this.
MIN_TILED_BATCH = 256  # below this a grid is pure per-step overhead
TILE_BATCH = 256       # batch tile (multiple of 8) for the gridded path


def _round_up(n, m):
    return ((n + m - 1) // m) * m


# ----------------------------------------------------------------------------
# Kernels
# ----------------------------------------------------------------------------
def _mlp6_kernel(x_ref, w_ref, b_ref, out_ref):
    """Fused 6-layer MLP on one batch tile.

    x_ref  : [tm, 128]           (input, zero-padded feature lanes)
    w_ref  : [6, 128, 128]       (packed weight slab, zero-padded)
    b_ref  : [6, 1, 128]         (packed bias slab, zero-padded)
    out_ref: [tm, 6*128] slab:
        [:, i*128:(i+1)*128] = h_{i+1} for i in 0..4 (ReLU layers)
        [:, 5*128:6*128]     = sigmoid(lin6(h5))
    """
    h = x_ref[...]
    for i in range(5):  # static unrolled layer loop; w_ref[i]/b_ref[i] are static views
        h = jnp.maximum(
            jnp.dot(h, w_ref[i], preferred_element_type=jnp.float32) + b_ref[i],
            0.0,
        )
        out_ref[:, i * LANE:(i + 1) * LANE] = h
    z = jnp.dot(h, w_ref[5], preferred_element_type=jnp.float32) + b_ref[5]
    out_ref[:, 5 * LANE:6 * LANE] = jax.nn.sigmoid(z)


def _mlp6_prob_kernel(x_ref, w_ref, b_ref, out_ref):
    """Inference-only variant: only the final sigmoid output is written."""
    h = x_ref[...]
    for i in range(5):
        h = jnp.maximum(
            jnp.dot(h, w_ref[i], preferred_element_type=jnp.float32) + b_ref[i],
            0.0,
        )
    z = jnp.dot(h, w_ref[5], preferred_element_type=jnp.float32) + b_ref[5]
    out_ref[...] = jax.nn.sigmoid(z)


# ----------------------------------------------------------------------------
# Parameter packing (done ONCE at init)
# ----------------------------------------------------------------------------
def pack_params(params):
    """Pack 6 (W [in,out], b [out]) pairs into lane-padded slabs.

    Returns (w_slab [6,128,128] f32, b_slab [6,1,128] f32, widths tuple).
    Call once and reuse the device arrays for every forward call.
    """
    assert len(params) == 6, "mlp6 has exactly 6 linear layers"
    w_np = np.zeros((6, LANE, LANE), np.float32)
    b_np = np.zeros((6, 1, LANE), np.float32)
    widths = []
    for i, (w, b) in enumerate(params):
        w = np.asarray(w, dtype=np.float32)
        b = np.asarray(b, dtype=np.float32).reshape(-1)
        din, dout = w.shape
        assert din <= LANE and dout <= LANE, "feature dims must be <= 128"
        w_np[i, :din, :dout] = w
        b_np[i, 0, :dout] = b
        widths.append(int(dout))
    return jnp.asarray(w_np), jnp.asarray(b_np), tuple(widths)


# ----------------------------------------------------------------------------
# pallas_call dispatch (single block for small B, batch-tiled grid otherwise)
# ----------------------------------------------------------------------------
def _run_packed(kernel, out_lanes, x, w_slab, b_slab):
    B, Din = x.shape
    assert Din <= LANE
    x = x.astype(jnp.float32)

    if B >= MIN_TILED_BATCH:
        tm = TILE_BATCH
        Bp = _round_up(B, tm)
        x_p = jnp.pad(x, ((0, Bp - B), (0, LANE - Din)))
        return pl.pallas_call(
            kernel,
            out_shape=jax.ShapeDtypeStruct((Bp, out_lanes), jnp.float32),
            grid_spec=pltpu.PrefetchScalarGridSpec(
                num_scalar_prefetch=0,
                grid=(Bp // tm,),
                in_specs=[
                    pl.BlockSpec((tm, LANE), lambda i: (i, 0)),
                    # weights/biases: constant index_map -> resident across steps
                    pl.BlockSpec((6, LANE, LANE), lambda i: (0, 0, 0)),
                    pl.BlockSpec((6, 1, LANE), lambda i: (0, 0, 0)),
                ],
                out_specs=pl.BlockSpec((tm, out_lanes), lambda i: (i, 0)),
            ),
            compiler_params=pltpu.CompilerParams(
                dimension_semantics=("parallel",)),
        )(x_p, w_slab, b_slab)

    # Small batch: whole problem is one VMEM block; a grid is pure overhead.
    Bp = _round_up(max(B, 8), 8)  # unmasked sublane stores
    x_p = jnp.pad(x, ((0, Bp - B), (0, LANE - Din)))
    return pl.pallas_call(
        kernel,
        out_shape=jax.ShapeDtypeStruct((Bp, out_lanes), jnp.float32),
        in_specs=[pl.BlockSpec(memory_space=pltpu.VMEM)] * 3,
        out_specs=pl.BlockSpec(memory_space=pltpu.VMEM),
    )(x_p, w_slab, b_slab)


# ----------------------------------------------------------------------------
# Public API: build jitted forward / prob closures over packed params
# ----------------------------------------------------------------------------
def make_mlp6(params):
    """Pack params once and return (forward, prob) jitted callables.

    forward(x) -> [x, h1, h2, h3, h4, h5, prob]   (matches PyTorch forward())
    prob(x)    -> prob only (no intermediate HBM writebacks)
    """
    w_slab, b_slab, widths = pack_params(params)
    out_dim = widths[-1]

    @jax.jit
    def _forward_impl(x, w_slab, b_slab):
        B = x.shape[0]
        slab = _run_packed(_mlp6_kernel, 6 * LANE, x, w_slab, b_slab)
        outs = [x]
        for i, d in enumerate(widths):
            outs.append(slab[:B, i * LANE:i * LANE + d])
        return outs

    @jax.jit
    def _prob_impl(x, w_slab, b_slab):
        B = x.shape[0]
        slab = _run_packed(_mlp6_prob_kernel, LANE, x, w_slab, b_slab)
        return slab[:B, :out_dim]

    forward = lambda x: _forward_impl(x, w_slab, b_slab)
    prob = lambda x: _prob_impl(x, w_slab, b_slab)
    return forward, prob


def init_params(key, arch):
    """Kaiming-normal weights (std = sqrt(2/fan_in)), zero biases,
    matching nn.init.kaiming_normal_ / constant_(bias, 0)."""
    params = []
    dims = list(zip(arch[:-1], arch[1:]))
    keys = jax.random.split(key, len(dims))
    for k, (fan_in, fan_out) in zip(keys, dims):
        std = (2.0 / fan_in) ** 0.5
        # stored as [in, out] (transpose of PyTorch's [out, in])
        w = std * jax.random.normal(k, (fan_in, fan_out), dtype=jnp.float32)
        b = jnp.zeros((fan_out,), dtype=jnp.float32)
        params.append((w, b))
    return params


if __name__ == "__main__":
    # arch = [input_dim, w1, w2, w3, w4, w5, output_dim]
    arch = [16, 32, 32, 32, 32, 32, 8]
    batch = 8

    key = jax.random.PRNGKey(0)
    kx, kp, kx2 = jax.random.split(key, 3)
    x = jax.random.normal(kx, (batch, arch[0]), dtype=jnp.float32)
    params = init_params(kp, arch)

    forward, prob = make_mlp6(params)

    def ref_forward(xv):
        refs = [xv]
        h = xv
        for i, (w, b) in enumerate(params):
            h = h @ w + b.reshape(1, -1)
            h = jnp.maximum(h, 0.0) if i < 5 else jax.nn.sigmoid(h)
            refs.append(h)
        return refs

    # --- small batch: single-block path ---
    op = forward(x)
    jax.block_until_ready(op)
    refs = ref_forward(x)
    assert len(op) == len(refs) == 7
    for got, want in zip(op, refs):
        assert got.shape == want.shape, (got.shape, want.shape)
        assert jnp.allclose(got, want, atol=1e-5, rtol=1e-5)

    p = prob(x)
    jax.block_until_ready(p)
    assert jnp.allclose(p, refs[-1], atol=1e-5, rtol=1e-5)

    # --- large batch: batch-tiled "parallel" grid path ---
    xb = jax.random.normal(kx2, (512, arch[0]), dtype=jnp.float32)
    opb = forward(xb)
    jax.block_until_ready(opb)
    refsb = ref_forward(xb)
    for got, want in zip(opb, refsb):
        assert got.shape == want.shape, (got.shape, want.shape)
        assert jnp.allclose(got, want, atol=1e-5, rtol=1e-5)

    pb = prob(xb)
    jax.block_until_ready(pb)
    assert jnp.allclose(pb, refsb[-1], atol=1e-5, rtol=1e-5)

    print("KERNEL_OK")
</pallas_src>

<mosaic_0001>
module attributes {stable_mosaic.version = 11 : i64} {
  func.func @_mlp6_kernel(%arg0: memref<8x128xf32, #tpu.memory_space<vmem>>, %arg1: memref<6x128x128xf32, #tpu.memory_space<vmem>>, %arg2: memref<6x1x128xf32, #tpu.memory_space<vmem>>, %arg3: memref<8x768xf32, #tpu.memory_space<vmem>>) attributes {dimension_semantics = [], scalar_prefetch = 0 : i64, scratch_operands = 0 : i64, tpu.core_type = #tpu.core_type<tc>} {
    %c0 = arith.constant 0 : index
    %c0_0 = arith.constant 0 : index
    %0 = vector.load %arg0[%c0, %c0_0] : memref<8x128xf32, #tpu.memory_space<vmem>>, vector<8x128xf32>
    %c0_1 = arith.constant 0 : index
    %c0_2 = arith.constant 0 : index
    %c0_3 = arith.constant 0 : index
    %1 = vector.load %arg1[%c0_1, %c0_2, %c0_3] : memref<6x128x128xf32, #tpu.memory_space<vmem>>, vector<1x128x128xf32>
    %2 = vector.shape_cast %1 : vector<1x128x128xf32> to vector<128x128xf32>
    %cst = arith.constant dense<0.000000e+00> : vector<8x128xf32>
    %3 = tpu.matmul %0, %2, %cst {dimension_numbers = #tpu.dot_dimension_numbers<[1], [0], [0], [1], [0, 0, 1, 1], [], []>} : vector<8x128xf32>, vector<128x128xf32>, vector<8x128xf32> -> vector<8x128xf32>
    %c0_4 = arith.constant 0 : index
    %c0_5 = arith.constant 0 : index
    %c0_6 = arith.constant 0 : index
    %4 = vector.load %arg2[%c0_4, %c0_5, %c0_6] : memref<6x1x128xf32, #tpu.memory_space<vmem>>, vector<1x1x128xf32>
    %5 = vector.shape_cast %4 : vector<1x1x128xf32> to vector<1x128xf32>
    %6 = vector.broadcast %5 : vector<1x128xf32> to vector<8x128xf32>
    %7 = arith.addf %3, %6 : vector<8x128xf32>
    %cst_7 = arith.constant 0.000000e+00 : f32
    %8 = vector.broadcast %cst_7 : f32 to vector<8x128xf32>
    %9 = arith.maximumf %7, %8 : vector<8x128xf32>
    %c0_8 = arith.constant 0 : index
    %c0_9 = arith.constant 0 : index
    %10 = vector.load %arg3[%c0_8, %c0_9] : memref<8x768xf32, #tpu.memory_space<vmem>>, vector<8x128xf32>
    tpu.vector_store %arg3[%c0_8, %c0_9], %9 {strides = array<i32>} : memref<8x768xf32, #tpu.memory_space<vmem>>, vector<8x128xf32>,
    %c1 = arith.constant 1 : index
    %c0_10 = arith.constant 0 : index
    %c0_11 = arith.constant 0 : index
    %11 = vector.load %arg1[%c1, %c0_10, %c0_11] : memref<6x128x128xf32, #tpu.memory_space<vmem>>, vector<1x128x128xf32>
    %12 = vector.shape_cast %11 : vector<1x128x128xf32> to vector<128x128xf32>
    %cst_12 = arith.constant dense<0.000000e+00> : vector<8x128xf32>
    %13 = tpu.matmul %9, %12, %cst_12 {dimension_numbers = #tpu.dot_dimension_numbers<[1], [0], [0], [1], [0, 0, 1, 1], [], []>} : vector<8x128xf32>, vector<128x128xf32>, vector<8x128xf32> -> vector<8x128xf32>
    %c1_13 = arith.constant 1 : index
    %c0_14 = arith.constant 0 : index
    %c0_15 = arith.constant 0 : index
    %14 = vector.load %arg2[%c1_13, %c0_14, %c0_15] : memref<6x1x128xf32, #tpu.memory_space<vmem>>, vector<1x1x128xf32>
    %15 = vector.shape_cast %14 : vector<1x1x128xf32> to vector<1x128xf32>
    %16 = vector.broadcast %15 : vector<1x128xf32> to vector<8x128xf32>
    %17 = arith.addf %13, %16 : vector<8x128xf32>
    %cst_16 = arith.constant 0.000000e+00 : f32
    %18 = vector.broadcast %cst_16 : f32 to vector<8x128xf32>
    %19 = arith.maximumf %17, %18 : vector<8x128xf32>
    %c0_17 = arith.constant 0 : index
    %c128 = arith.constant 128 : index
    %20 = vector.load %arg3[%c0_17, %c128] : memref<8x768xf32, #tpu.memory_space<vmem>>, vector<8x128xf32>
    tpu.vector_store %arg3[%c0_17, %c128], %19 {strides = array<i32>} : memref<8x768xf32, #tpu.memory_space<vmem>>, vector<8x128xf32>,
    %c2 = arith.constant 2 : index
    %c0_18 = arith.constant 0 : index
    %c0_19 = arith.constant 0 : index
    %21 = vector.load %arg1[%c2, %c0_18, %c0_19] : memref<6x128x128xf32, #tpu.memory_space<vmem>>, vector<1x128x128xf32>
    %22 = vector.shape_cast %21 : vector<1x128x128xf32> to vector<128x128xf32>
    %cst_20 = arith.constant dense<0.000000e+00> : vector<8x128xf32>
    %23 = tpu.matmul %19, %22, %cst_20 {dimension_numbers = #tpu.dot_dimension_numbers<[1], [0], [0], [1], [0, 0, 1, 1], [], []>} : vector<8x128xf32>, vector<128x128xf32>, vector<8x128xf32> -> vector<8x128xf32>
    %c2_21 = arith.constant 2 : index
    %c0_22 = arith.constant 0 : index
    %c0_23 = arith.constant 0 : index
    %24 = vector.load %arg2[%c2_21, %c0_22, %c0_23] : memref<6x1x128xf32, #tpu.memory_space<vmem>>, vector<1x1x128xf32>
    %25 = vector.shape_cast %24 : vector<1x1x128xf32> to vector<1x128xf32>
    %26 = vector.broadcast %25 : vector<1x128xf32> to vector<8x128xf32>
    %27 = arith.addf %23, %26 : vector<8x128xf32>
    %cst_24 = arith.constant 0.000000e+00 : f32
    %28 = vector.broadcast %cst_24 : f32 to vector<8x128xf32>
    %29 = arith.maximumf %27, %28 : vector<8x128xf32>
    %c0_25 = arith.constant 0 : index
    %c256 = arith.constant 256 : index
    %30 = vector.load %arg3[%c0_25, %c256] : memref<8x768xf32, #tpu.memory_space<vmem>>, vector<8x128xf32>
    tpu.vector_store %arg3[%c0_25, %c256], %29 {strides = array<i32>} : memref<8x768xf32, #tpu.memory_space<vmem>>, vector<8x128xf32>,
    %c3 = arith.constant 3 : index
    %c0_26 = arith.constant 0 : index
    %c0_27 = arith.constant 0 : index
    %31 = vector.load %arg1[%c3, %c0_26, %c0_27] : memref<6x128x128xf32, #tpu.memory_space<vmem>>, vector<1x128x128xf32>
    %32 = vector.shape_cast %31 : vector<1x128x128xf32> to vector<128x128xf32>
    %cst_28 = arith.constant dense<0.000000e+00> : vector<8x128xf32>
    %33 = tpu.matmul %29, %32, %cst_28 {dimension_numbers = #tpu.dot_dimension_numbers<[1], [0], [0], [1], [0, 0, 1, 1], [], []>} : vector<8x128xf32>, vector<128x128xf32>, vector<8x128xf32> -> vector<8x128xf32>
    %c3_29 = arith.constant 3 : index
    %c0_30 = arith.constant 0 : index
    %c0_31 = arith.constant 0 : index
    %34 = vector.load %arg2[%c3_29, %c0_30, %c0_31] : memref<6x1x128xf32, #tpu.memory_space<vmem>>, vector<1x1x128xf32>
    %35 = vector.shape_cast %34 : vector<1x1x128xf32> to vector<1x128xf32>
    %36 = vector.broadcast %35 : vector<1x128xf32> to vector<8x128xf32>
    %37 = arith.addf %33, %36 : vector<8x128xf32>
    %cst_32 = arith.constant 0.000000e+00 : f32
    %38 = vector.broadcast %cst_32 : f32 to vector<8x128xf32>
    %39 = arith.maximumf %37, %38 : vector<8x128xf32>
    %c0_33 = arith.constant 0 : index
    %c384 = arith.constant 384 : index
    %40 = vector.load %arg3[%c0_33, %c384] : memref<8x768xf32, #tpu.memory_space<vmem>>, vector<8x128xf32>
    tpu.vector_store %arg3[%c0_33, %c384], %39 {strides = array<i32>} : memref<8x768xf32, #tpu.memory_space<vmem>>, vector<8x128xf32>,
    %c4 = arith.constant 4 : index
    %c0_34 = arith.constant 0 : index
    %c0_35 = arith.constant 0 : index
    %41 = vector.load %arg1[%c4, %c0_34, %c0_35] : memref<6x128x128xf32, #tpu.memory_space<vmem>>, vector<1x128x128xf32>
    %42 = vector.shape_cast %41 : vector<1x128x128xf32> to vector<128x128xf32>
    %cst_36 = arith.constant dense<0.000000e+00> : vector<8x128xf32>
    %43 = tpu.matmul %39, %42, %cst_36 {dimension_numbers = #tpu.dot_dimension_numbers<[1], [0], [0], [1], [0, 0, 1, 1], [], []>} : vector<8x128xf32>, vector<128x128xf32>, vector<8x128xf32> -> vector<8x128xf32>
    %c4_37 = arith.constant 4 : index
    %c0_38 = arith.constant 0 : index
    %c0_39 = arith.constant 0 : index
    %44 = vector.load %arg2[%c4_37, %c0_38, %c0_39] : memref<6x1x128xf32, #tpu.memory_space<vmem>>, vector<1x1x128xf32>
    %45 = vector.shape_cast %44 : vector<1x1x128xf32> to vector<1x128xf32>
    %46 = vector.broadcast %45 : vector<1x128xf32> to vector<8x128xf32>
    %47 = arith.addf %43, %46 : vector<8x128xf32>
    %cst_40 = arith.constant 0.000000e+00 : f32
    %48 = vector.broadcast %cst_40 : f32 to vector<8x128xf32>
    %49 = arith.maximumf %47, %48 : vector<8x128xf32>
    %c0_41 = arith.constant 0 : index
    %c512 = arith.constant 512 : index
    %50 = vector.load %arg3[%c0_41, %c512] : memref<8x768xf32, #tpu.memory_space<vmem>>, vector<8x128xf32>
    tpu.vector_store %arg3[%c0_41, %c512], %49 {strides = array<i32>} : memref<8x768xf32, #tpu.memory_space<vmem>>, vector<8x128xf32>,
    %c5 = arith.constant 5 : index
    %c0_42 = arith.constant 0 : index
    %c0_43 = arith.constant 0 : index
    %51 = vector.load %arg1[%c5, %c0_42, %c0_43] : memref<6x128x128xf32, #tpu.memory_space<vmem>>, vector<1x128x128xf32>
    %52 = vector.shape_cast %51 : vector<1x128x128xf32> to vector<128x128xf32>
    %cst_44 = arith.constant dense<0.000000e+00> : vector<8x128xf32>
    %53 = tpu.matmul %49, %52, %cst_44 {dimension_numbers = #tpu.dot_dimension_numbers<[1], [0], [0], [1], [0, 0, 1, 1], [], []>} : vector<8x128xf32>, vector<128x128xf32>, vector<8x128xf32> -> vector<8x128xf32>
    %c5_45 = arith.constant 5 : index
    %c0_46 = arith.constant 0 : index
    %c0_47 = arith.constant 0 : index
    %54 = vector.load %arg2[%c5_45, %c0_46, %c0_47] : memref<6x1x128xf32, #tpu.memory_space<vmem>>, vector<1x1x128xf32>
    %55 = vector.shape_cast %54 : vector<1x1x128xf32> to vector<1x128xf32>
    %56 = vector.broadcast %55 : vector<1x128xf32> to vector<8x128xf32>
    %57 = arith.addf %53, %56 : vector<8x128xf32>
    %58 = arith.negf %57 : vector<8x128xf32>
    %59 = math.exp %58 : vector<8x128xf32>
    %cst_48 = arith.constant 1.000000e+00 : f32
    %60 = vector.broadcast %cst_48 : f32 to vector<8x128xf32>
    %61 = arith.addf %60, %59 : vector<8x128xf32>
    %62 = arith.divf %60, %61 : vector<8x128xf32>
    %c0_49 = arith.constant 0 : index
    %c640 = arith.constant 640 : index
    %63 = vector.load %arg3[%c0_49, %c640] : memref<8x768xf32, #tpu.memory_space<vmem>>, vector<8x128xf32>
    tpu.vector_store %arg3[%c0_49, %c640], %62 {strides = array<i32>} : memref<8x768xf32, #tpu.memory_space<vmem>>, vector<8x128xf32>,
    return
  }
}

</mosaic_0001>

<bundles_post_ra>
// kernel: _forward_impl.1
= control target key start
LH: loop header
LB: loop body
LE: loop exit
PB: predicated region body
PF: predicated region fallthrough
CT: control target
= control target key end

     0   :  { %8 = vsyncpa [#allocation3], 0  ;;  %s361_s15 = smov [#allocation2]   ;;  %s362_s17 = smov 128   ;;  %s426_s0 = inlined_call_operand.vmem [shape: f32[8,128], index: 0, kind: input, shape index: {}]   ;;  %s427_s1 = inlined_call_operand.hbm [shape: f32[6,128,128], index: 1, kind: input, shape index: {}]   ;;  %s428_s2 = inlined_call_operand.vmem [shape: f32[6,1,128], index: 2, kind: input, shape index: {}]   ;;  %s429_s3 = inlined_call_operand.vmem [shape: f32[8,768], index: 3, kind: output, shape index: {}]  }
   0x1   :  { %s15_s14 = sshll.u32 %s427_s1, 4  ;;  %s17_s16 = sshll.u32 %s361_s15, 4  ;;  %s16_s14 = int_to_ptr.hbm [resolvable:$true] %s15_s14  ;;  %s18_s16 = int_to_ptr.vmem [resolvable:$true] %s17_s16 }
   0x2   :  { %s363_s18 = smov 8  }
   0x3   :  { %23 = dma.hbm_to_vmem [thread:$0]  %s16_s14, 12288, %s18_s16, [#allocation3], %s362_s17, %s362_s17, %s363_s18  }
   0x4   :  { %359 = dma.done.wait [#allocation3], 12288  }
   0x5   :  { %360 = vsyncadd [#allocation3], 4294955008  ;;  %v46_v0 = vld [vmem:[#allocation2 + $0x78] sm:$0xff]  ;;  %v45_v1 = vld [vmem:[#allocation2 + $0x70] sm:$0xff] }
   0x6   :  { %51 = vmatpush.msra.mxu0 %v46_v0  ;;  %v44_v2 = vld [vmem:[#allocation2 + $0x68] sm:$0xff]  ;;  %v43_v3 = vld [vmem:[#allocation2 + $0x60] sm:$0xff]  ;;  %v89_v4 = vld [vmem:[#allocation2 + $0xf8] sm:$0xff] }
   0x7   :  { %v42_v5 = vld [vmem:[#allocation2 + $0x58] sm:$0xff]  ;;  %95 = vmatpush.msra.mxu1 %v89_v4  ;;  %v88_v6 = vld [vmem:[#allocation2 + $0xf0] sm:$0xff]  ;;  %v87_v7 = vld [vmem:[#allocation2 + $0xe8] sm:$0xff] }
   0x8   :  { %52 = vmatpush.msra.mxu0 %v45_v1  ;;  %v41_v8 = vld [vmem:[#allocation2 + $0x50] sm:$0xff]  ;;  %v40_v9 = vld [vmem:[#allocation2 + $0x48] sm:$0xff]  ;;  %v86_v10 = vld [vmem:[#allocation2 + $0xe0] sm:$0xff] }
   0x9   :  { %96 = vmatpush.msra.mxu1 %v88_v6  ;;  %v85_v11 = vld [vmem:[#allocation2 + $0xd8] sm:$0xff]  ;;  %v39_v12 = vld [vmem:[#allocation2 + $0x40] sm:$0xff]  ;;  %v84_v13 = vld [vmem:[#allocation2 + $0xd0] sm:$0xff] }
   0xa   :  { %53 = vmatpush.msra.mxu0 %v44_v2  ;;  %v38_v14 = vld [vmem:[#allocation2 + $0x38] sm:$0xff]  ;;  %v83_v15 = vld [vmem:[#allocation2 + $0xc8] sm:$0xff]  ;;  %v37_v16 = vld [vmem:[#allocation2 + $0x30] sm:$0xff] }
   0xb   :  { %97 = vmatpush.msra.mxu1 %v87_v7  ;;  %v82_v17 = vld [vmem:[#allocation2 + $0xc0] sm:$0xff]  ;;  %v36_v18 = vld [vmem:[#allocation2 + $0x28] sm:$0xff]  ;;  %v81_v19 = vld [vmem:[#allocation2 + $0xb8] sm:$0xff] }
   0xc   :  { %54 = vmatpush.msra.mxu0 %v43_v3  ;;  %v35_v20 = vld [vmem:[#allocation2 + $0x20] sm:$0xff]  ;;  %v80_v21 = vld [vmem:[#allocation2 + $0xb0] sm:$0xff]  ;;  %v34_v22 = vld [vmem:[#allocation2 + $0x18] sm:$0xff] }
   0xd   :  { %98 = vmatpush.msra.mxu1 %v86_v10  ;;  %v79_v23 = vld [vmem:[#allocation2 + $0xa8] sm:$0xff]  ;;  %v33_v24 = vld [vmem:[#allocation2 + $0x10] sm:$0xff]  ;;  %v78_v25 = vld [vmem:[#allocation2 + $0xa0] sm:$0xff] }
   0xe   :  { %55 = vmatpush.msra.mxu0 %v42_v5  ;;  %v32_v26 = vld [vmem:[#allocation2 + $0x8] sm:$0xff]  ;;  %v77_v27 = vld [vmem:[#allocation2 + $0x98] sm:$0xff]  ;;  %v31_v28 = vld [vmem:[#allocation2] sm:$0xff] }
   0xf   :  { %99 = vmatpush.msra.mxu1 %v85_v11  ;;  %v30_v29 = vld [vmem:[%s426_s0] sm:$0xff]  ;;  %v76_v30 = vld [vmem:[#allocation2 + $0x90] sm:$0xff]  ;;  %v75_v31 = vld [vmem:[#allocation2 + $0x88] sm:$0xff] }
  0x10   :  { %56 = vmatpush.msra.mxu0 %v41_v8  ;;  %v74_v32 = vld [vmem:[#allocation2 + $0x80] sm:$0xff]  ;;  %v133_v33 = vld [vmem:[#allocation2 + $0x178] sm:$0xff]  ;;  %v132_v34 = vld [vmem:[#allocation2 + $0x170] sm:$0xff] }
  0x11   :  { %100 = vmatpush.msra.mxu1 %v84_v13  ;;  %139 = vmatpush.msra.mxu2 %v133_v33  ;;  %v131_v35 = vld [vmem:[#allocation2 + $0x168] sm:$0xff]  ;;  %v130_v36 = vld [vmem:[#allocation2 + $0x160] sm:$0xff]  ;;  %v129_v37 = vld [vmem:[#allocation2 + $0x158] sm:$0xff] }
  0x12   :  { %57 = vmatpush.msra.mxu0 %v40_v9  ;;  %v128_v38 = vld [vmem:[#allocation2 + $0x150] sm:$0xff]  ;;  %v127_v39 = vld [vmem:[#allocation2 + $0x148] sm:$0xff]  ;;  %v126_v40 = vld [vmem:[#allocation2 + $0x140] sm:$0xff] }
  0x13   :  { %101 = vmatpush.msra.mxu1 %v83_v15  ;;  %140 = vmatpush.msra.mxu2 %v132_v34  ;;  %v125_v41 = vld [vmem:[#allocation2 + $0x138] sm:$0xff]  ;;  %v124_v42 = vld [vmem:[#allocation2 + $0x130] sm:$0xff]  ;;  %v123_v43 = vld [vmem:[#allocation2 + $0x128] sm:$0xff] }
  0x14   :  { %58 = vmatpush.msra.mxu0 %v39_v12  ;;  %v122_v44 = vld [vmem:[#allocation2 + $0x120] sm:$0xff]  ;;  %v121_v45 = vld [vmem:[#allocation2 + $0x118] sm:$0xff]  ;;  %v120_v50 = vld [vmem:[#allocation2 + $0x110] sm:$0xff] }
  0x15   :  { %102 = vmatpush.msra.mxu1 %v82_v17  ;;  %141 = vmatpush.msra.mxu2 %v131_v35  ;;  %v325_v46 = vld [vmem:[%s428_s2] ss:$0 sm:$0xff]  ;;  %v119_v51 = vld [vmem:[#allocation2 + $0x108] sm:$0xff]  ;;  %v177_v53 = vld [vmem:[#allocation2 + $0x1f8] sm:$0xff] }
  0x16   :  { %59 = vmatpush.msra.mxu0 %v38_v14  ;;  %v118_v52 = vld [vmem:[#allocation2 + $0x100] sm:$0xff]  ;;  %v176_v54 = vld [vmem:[#allocation2 + $0x1f0] sm:$0xff]  ;;  %183 = vmatpush.msra.mxu3 %v177_v53  ;;  %v175_v55 = vld [vmem:[#allocation2 + $0x1e8] sm:$0xff] }
  0x17   :  { %103 = vmatpush.msra.mxu1 %v81_v19  ;;  %142 = vmatpush.msra.mxu2 %v130_v36  ;;  %v174_v56 = vld [vmem:[#allocation2 + $0x1e0] sm:$0xff]  ;;  %v173_v57 = vld [vmem:[#allocation2 + $0x1d8] sm:$0xff]  ;;  %v172_v58 = vld [vmem:[#allocation2 + $0x1d0] sm:$0xff] }
  0x18   :  { %60 = vmatpush.msra.mxu0 %v37_v16  ;;  %184 = vmatpush.msra.mxu3 %v176_v54  ;;  %v171_v59 = vld [vmem:[#allocation2 + $0x1c8] sm:$0xff]  ;;  %v170_v60 = vld [vmem:[#allocation2 + $0x1c0] sm:$0xff]  ;;  %v169_v61 = vld [vmem:[#allocation2 + $0x1b8] sm:$0xff] }
  0x19   :  { %104 = vmatpush.msra.mxu1 %v80_v21  ;;  %143 = vmatpush.msra.mxu2 %v129_v37  ;;  %v168_v62 = vld [vmem:[#allocation2 + $0x1b0] sm:$0xff]  ;;  %v167_v63 = vld [vmem:[#allocation2 + $0x1a8] sm:$0xff]  ;;  %v166_v0 = vld [vmem:[#allocation2 + $0x1a0] sm:$0xff] }
  0x1a   :  { %61 = vmatpush.msra.mxu0 %v36_v18  ;;  %185 = vmatpush.msra.mxu3 %v175_v55  ;;  %v165_v1 = vld [vmem:[#allocation2 + $0x198] sm:$0xff]  ;;  %v326_v2 = vld [vmem:[%s428_s2 + $0x1] ss:$0 sm:$0xff]  ;;  %v164_v6 = vld [vmem:[#allocation2 + $0x190] sm:$0xff] }
  0x1b   :  { %105 = vmatpush.msra.mxu1 %v79_v23  ;;  %144 = vmatpush.msra.mxu2 %v128_v38  ;;  %v163_v7 = vld [vmem:[#allocation2 + $0x188] sm:$0xff]  ;;  %v162_v8 = vld [vmem:[#allocation2 + $0x180] sm:$0xff]  ;;  %v221_v9 = vld [vmem:[#allocation2 + $0x278] sm:$0xff] }
  0x1c   :  { %62 = vmatpush.msra.mxu0 %v35_v20  ;;  %186 = vmatpush.msra.mxu3 %v174_v56  ;;  %v220_v10 = vld [vmem:[#allocation2 + $0x270] sm:$0xff]  ;;  %v219_v11 = vld [vmem:[#allocation2 + $0x268] sm:$0xff]  ;;  %v218_v12 = vld [vmem:[#allocation2 + $0x260] sm:$0xff] }
  0x1d   :  { %106 = vmatpush.msra.mxu1 %v78_v25  ;;  %145 = vmatpush.msra.mxu2 %v127_v39  ;;  %v217_v13 = vld [vmem:[#allocation2 + $0x258] sm:$0xff]  ;;  %v216_v14 = vld [vmem:[#allocation2 + $0x250] sm:$0xff]  ;;  %v215_v15 = vld [vmem:[#allocation2 + $0x248] sm:$0xff] }
  0x1e   :  { %63 = vmatpush.msra.mxu0 %v34_v22  ;;  %187 = vmatpush.msra.mxu3 %v173_v57  ;;  %v214_v16 = vld [vmem:[#allocation2 + $0x240] sm:$0xff]  ;;  %v213_v17 = vld [vmem:[#allocation2 + $0x238] sm:$0xff]  ;;  %v212_v18 = vld [vmem:[#allocation2 + $0x230] sm:$0xff] }
  0x1f   :  { %107 = vmatpush.msra.mxu1 %v77_v27  ;;  %146 = vmatpush.msra.mxu2 %v126_v40  ;;  %v211_v19 = vld [vmem:[#allocation2 + $0x228] sm:$0xff]  ;;  %v210_v20 = vld [vmem:[#allocation2 + $0x220] sm:$0xff]  ;;  %v209_v21 = vld [vmem:[#allocation2 + $0x218] sm:$0xff] }
  0x20   :  { %64 = vmatpush.msra.mxu0 %v33_v24  ;;  %188 = vmatpush.msra.mxu3 %v172_v58  ;;  %v327_v22 = vld [vmem:[%s428_s2 + $0x2] ss:$0 sm:$0xff]  ;;  %v207_v27 = vld [vmem:[#allocation2 + $0x208] sm:$0xff]  ;;  %v261_v33 = vld [vmem:[#allocation2 + $0x2d8] sm:$0xff] }
  0x21   :  { %108 = vmatpush.msra.mxu1 %v76_v30  ;;  %147 = vmatpush.msra.mxu2 %v125_v41  ;;  %v264_v30 = vld [vmem:[#allocation2 + $0x2f0] sm:$0xff]  ;;  %v259_v35 = vld [vmem:[#allocation2 + $0x2c8] sm:$0xff]  ;;  %v258_v36 = vld [vmem:[#allocation2 + $0x2c0] sm:$0xff] }
  0x22   :  { %65 = vmatpush.msra.mxu0 %v32_v26  ;;  %189 = vmatpush.msra.mxu3 %v171_v59  ;;  %v208_v26 = vld [vmem:[#allocation2 + $0x210] sm:$0xff]  ;;  %v257_v37 = vld [vmem:[#allocation2 + $0x2b8] sm:$0xff]  ;;  %v255_v39 = vld [vmem:[#allocation2 + $0x2a8] sm:$0xff] }
  0x23   :  { %109 = vmatpush.msra.mxu1 %v75_v31  ;;  %148 = vmatpush.msra.mxu2 %v124_v42  ;;  %v263_v31 = vld [vmem:[#allocation2 + $0x2e8] sm:$0xff]  ;;  %v260_v34 = vld [vmem:[#allocation2 + $0x2d0] sm:$0xff]  ;;  %v254_v40 = vld [vmem:[#allocation2 + $0x2a0] sm:$0xff] }
  0x24   :  { %66 = vmatpush.msra.mxu0 %v31_v28  ;;  %190 = vmatpush.msra.mxu3 %v170_v60  ;;  %v206_v28 = vld [vmem:[#allocation2 + $0x200] sm:$0xff]  ;;  %v256_v38 = vld [vmem:[#allocation2 + $0x2b0] sm:$0xff]  ;;  %v253_v41 = vld [vmem:[#allocation2 + $0x298] sm:$0xff] }
  0x25   :  { %67 = vmatmul.f32.vlgmr.msra.gmra.mxu0 %v30_v29  ;;  %110 = vmatpush.msra.mxu1 %v74_v32  ;;  %v265_v29 = vld [vmem:[#allocation2 + $0x2f8] sm:$0xff]  ;;  %v262_v32 = vld [vmem:[#allocation2 + $0x2e0] sm:$0xff] }
  0x26   :  { %149 = vmatpush.msra.mxu2 %v123_v43  ;;  %191 = vmatpush.msra.mxu3 %v169_v61  ;;  %v328_v42 = vld [vmem:[%s428_s2 + $0x3] ss:$0 sm:$0xff]  ;;  %v330_v53 = vld [vmem:[%s428_s2 + $0x5] ss:$0 sm:$0xff] }
  0x27   :  { %227 = vmatpush.msrb.mxu0 %v221_v9  ;;  %271 = vmatpush.msrb.mxu1 %v265_v29 }
  0x28   :  { %150 = vmatpush.msra.mxu2 %v122_v44  ;;  %192 = vmatpush.msra.mxu3 %v168_v62 }
  0x29   :  { %228 = vmatpush.msrb.mxu0 %v220_v10  ;;  %272 = vmatpush.msrb.mxu1 %v264_v30 }
  0x2a   :  { %151 = vmatpush.msra.mxu2 %v121_v45  ;;  %193 = vmatpush.msra.mxu3 %v167_v63 }
  0x2b   :  { %229 = vmatpush.msrb.mxu0 %v219_v11  ;;  %273 = vmatpush.msrb.mxu1 %v263_v31 }
  0x2c   :  { %152 = vmatpush.msra.mxu2 %v120_v50  ;;  %194 = vmatpush.msra.mxu3 %v166_v0 }
  0x2d   :  { %230 = vmatpush.msrb.mxu0 %v218_v12  ;;  %274 = vmatpush.msrb.mxu1 %v262_v32 }
  0x2e   :  { %153 = vmatpush.msra.mxu2 %v119_v51  ;;  %195 = vmatpush.msra.mxu3 %v165_v1 }
  0x2f   :  { %231 = vmatpush.msrb.mxu0 %v217_v13  ;;  %275 = vmatpush.msrb.mxu1 %v261_v33 }
  0x30   :  { %154 = vmatpush.msra.mxu2 %v118_v52  ;;  %196 = vmatpush.msra.mxu3 %v164_v6 }
  0x31   :  { %232 = vmatpush.msrb.mxu0 %v216_v14  ;;  %276 = vmatpush.msrb.mxu1 %v260_v34 }
  0x32   :  { %197 = vmatpush.msra.mxu3 %v163_v7 }
  0x33   :  { %233 = vmatpush.msrb.mxu0 %v215_v15  ;;  %277 = vmatpush.msrb.mxu1 %v259_v35 }
  0x34   :  { %198 = vmatpush.msra.mxu3 %v162_v8 }
  0x35   :  { %234 = vmatpush.msrb.mxu0 %v214_v16  ;;  %278 = vmatpush.msrb.mxu1 %v258_v36 }
  0x37   :  { %235 = vmatpush.msrb.mxu0 %v213_v17  ;;  %279 = vmatpush.msrb.mxu1 %v257_v37 }
  0x39   :  { %236 = vmatpush.msrb.mxu0 %v212_v18  ;;  %280 = vmatpush.msrb.mxu1 %v256_v38 }
  0x3b   :  { %237 = vmatpush.msrb.mxu0 %v211_v19  ;;  %281 = vmatpush.msrb.mxu1 %v255_v39 }
  0x3d   :  { %238 = vmatpush.msrb.mxu0 %v210_v20  ;;  %282 = vmatpush.msrb.mxu1 %v254_v40 }
  0x3f   :  { %239 = vmatpush.msrb.mxu0 %v209_v21  ;;  %283 = vmatpush.msrb.mxu1 %v253_v41 }
  0x41   :  { %240 = vmatpush.msrb.mxu0 %v208_v26 }
  0x43   :  { %241 = vmatpush.msrb.mxu0 %v207_v27 }
  0x45   :  { %242 = vmatpush.msrb.mxu0 %v206_v28 }
  0xa2   :  { %v68_v47 = vpop.f32.mrf.mxu0 }
  0xa3   :  { %v69_v48 = vadd.f32 %v325_v46, %v68_v47  ;;  %v252_v46 = vld [vmem:[#allocation2 + $0x290] sm:$0xff]  ;;  %v251_v47 = vld [vmem:[#allocation2 + $0x288] sm:$0xff] }
  0xa4   :  { %284 = vmatpush.msrb.mxu1 %v252_v46 }
  0xa5   :  { %v71_v49 = vmax.f32 %v69_v48, 0.0  ;;  %v250_v48 = vld [vmem:[#allocation2 + $0x280] sm:$0xff] }
  0xa6   :  { %285 = vmatpush.msrb.mxu1 %v251_v47 }
  0xa7   :  { %72 = vst [vmem:[%s429_s3] sm:$0xff] %v71_v49  ;;  %111 = vmatmul.f32.vlgmr.msra.gmra.mxu1 %v71_v49  ;;  %v329_v49 = vld [vmem:[%s428_s2 + $0x4] ss:$0 sm:$0xff] }
  0xa8   :  { %286 = vmatpush.msrb.mxu1 %v250_v48 }
 0x124   :  { %v112_v3 = vpop.f32.mrf.mxu1 }
 0x125   :  { %v113_v4 = vadd.f32 %v326_v2, %v112_v3 }
 0x127   :  { %v115_v5 = vmax.f32 %v113_v4, 0.0 }
 0x129   :  { %116 = vst [vmem:[%s429_s3 + $0x8] sm:$0xff] %v115_v5  ;;  %155 = vmatmul.f32.vlgmr.msra.gmra.mxu2 %v115_v5 }
 0x1ac   :  { %v156_v23 = vpop.f32.mrf.mxu2 }
 0x1ad   :  { %v157_v24 = vadd.f32 %v327_v22, %v156_v23 }
 0x1af   :  { %v159_v25 = vmax.f32 %v157_v24, 0.0 }
 0x1b1   :  { %160 = vst [vmem:[%s429_s3 + $0x10] sm:$0xff] %v159_v25  ;;  %199 = vmatmul.f32.vlgmr.msra.gmra.mxu3 %v159_v25 }
 0x234   :  { %v200_v43 = vpop.f32.mrf.mxu3 }
 0x235   :  { %v201_v44 = vadd.f32 %v328_v42, %v200_v43 }
 0x237   :  { %v203_v45 = vmax.f32 %v201_v44, 0.0 }
 0x239   :  { %204 = vst [vmem:[%s429_s3 + $0x18] sm:$0xff] %v203_v45  ;;  %243 = vmatmul.f32.vlgmr.msrb.gmra.mxu0 %v203_v45 }
 0x2b6   :  { %v244_v50 = vpop.f32.mrf.mxu0 }
 0x2b7   :  { %v245_v51 = vadd.f32 %v329_v49, %v244_v50 }
 0x2b9   :  { %v247_v52 = vmax.f32 %v245_v51, 0.0 }
 0x2bb   :  { %248 = vst [vmem:[%s429_s3 + $0x20] sm:$0xff] %v247_v52  ;;  %287 = vmatmul.f32.vlgmr.msrb.gmra.mxu1 %v247_v52 }
 0x338   :  { %v288_v54 = vpop.f32.mrf.mxu1 }
 0x339   :  { %v289_v55 = vadd.f32 %v330_v53, %v288_v54 }
 0x33b   :  { %v321_v56 = vmul.f32 -1.442695, %v289_v55 }
 0x33d   :  { %331 = vpow2.f32 %v321_v56 }
 0x343   :  { %v332_v57 = vpop.eup %331 }
 0x344   :  { %v294_v58 = vadd.f32 1.0, %v332_v57 }
 0x346   :  { %333 = vrcp.f32 %v294_v58  ;;  %v306_v62 = vand.u32 2147483648, %v294_v58  ;;  %v304_v0 = vand.u32 2147483647, %v294_v58  ;;  %vm300_vm1 = vweird.f32 %v294_v58 }
 0x348   :  { %v307_v2 = vor.u32 1.1754944e-38, %v306_v62  ;;  %vm305_vm3 = vcmp.eq.f32.partialorder %v304_v0, 8.507059e+37 }
 0x34c   :  { %v334_v59 = vpop.eup %333 }
 0x34d   :  { %v296_v60 = vmul.f32 %v334_v59, %v294_v58  ;;  %vm301_vm0 = vweird.f32 %v334_v59 }
 0x34e   :  { %vm302_vm2 = vmor %vm300_vm1, %vm301_vm0 }
 0x34f   :  { %v297_v61 = vsub.f32 1.0, %v296_v60 }
 0x351   :  { %v298_v63 = vmul.f32 %v334_v59, %v297_v61 }
 0x353   :  { %v299_v1 = vadd.f32 %v334_v59, %v298_v63 }
 0x355   :  { %v303_v3 = vsel %vm302_vm2, %v334_v59, %v299_v1 }
 0x356   :  { %v308_v4 = vsel %vm305_vm3, %v307_v2, %v303_v3 }
 0x357   :  { %310 = vst [vmem:[%s429_s3 + $0x28] sm:$0xff] %v308_v4 }
 0x358   :  { %315 = vsyncpa [#allocation3], 1 }

</bundles_post_ra>
